<compile_context>
chip_gen: v7x
topology: tpu7x:2x2x1
jax: 0.10.0
libtpu: 0.0.40
codegen_flags: <defaults>
</compile_context>

<pallas_src>
import functools

import jax
import jax.numpy as jnp
import numpy as np
from jax.experimental import pallas as pl
from jax.experimental.pallas import tpu as pltpu

EPS = 1e-5            # nn.BatchNorm2d default eps
NEG_SLOPE = 0.2       # nn.LeakyReLU(0.2)
NB_FILTERS = 64       # module default (test below uses a scaled-down value)
LANE = 128
VMEM_LIMIT = 48 * 1024 * 1024   # leaves headroom even on v7x's 64 MiB VMEM


def _rup(n, m):
    return ((n + m - 1) // m) * m


def _row_tile(h, row_elems, budget_bytes=2 * 1024 * 1024):
    """Largest divisor of h whose (rows x row_elems) f32 block stays under budget."""
    best = 1
    for t in range(1, h + 1):
        if h % t == 0 and t * row_elems * 4 <= budget_bytes:
            best = t
    return best


def _activate(z, act):
    if act == "leaky":
        return jnp.where(z >= 0, z, NEG_SLOPE * z)
    if act == "tanh":
        return jnp.tanh(z)
    return z


# ---------------------------------------------------------------------------
# Pass 1: shift-and-matmul conv + per-image BN partial statistics
# ---------------------------------------------------------------------------
def _conv_stats_kernel(x_ref, w_ref, mask_ref, y_ref, s1_ref, s2_ref, *, tap_offsets):
    """One image per grid step.

    x_ref:    (Lp, Cin)         bf16  spatially padded image, rows flattened (H*W)
    w_ref:    (KK, Cin, Coutp)  bf16  per-tap weight matrices (Coutp lane-padded)
    mask_ref: (rows, 1)         f32   1.0 on valid output columns, 0.0 on pad cols
    y_ref:    (rows, Coutp)     bf16  conv output, row stride = padded width
    s1/s2:    (1, Coutp)        f32   per-image sum / sum-of-squares (valid pixels)
    """
    rows = y_ref.shape[0]
    acc = None
    for k, off in enumerate(tap_offsets):
        win = x_ref[off:off + rows, :]                       # contiguous static slice
        part = jnp.dot(win, w_ref[k], preferred_element_type=jnp.float32)
        acc = part if acc is None else acc + part
    acc = acc * mask_ref[...]                                # zero wrap-around columns
    y_ref[...] = acc.astype(y_ref.dtype)
    s1_ref[...] = jnp.sum(acc, axis=0, keepdims=True)
    s2_ref[...] = jnp.sum(acc * acc, axis=0, keepdims=True)


# ---------------------------------------------------------------------------
# Pass 2: fused BN(scale/shift) + activation (+ residual / skip add)
# ---------------------------------------------------------------------------
def _affine_act_kernel(y_ref, sc_ref, sh_ref, o_ref, *, act):
    wout = o_ref.shape[-2]
    z = y_ref[...].astype(jnp.float32) * sc_ref[...] + sh_ref[...]
    o_ref[...] = _activate(z, act)[:, :wout, :].astype(o_ref.dtype)


def _affine_act_res_kernel(y_ref, sc_ref, sh_ref, r_ref, o_ref, *, act):
    wout = o_ref.shape[-2]
    z = y_ref[...].astype(jnp.float32) * sc_ref[...] + sh_ref[...]
    z = _activate(z, act)[:, :wout, :] + r_ref[...].astype(jnp.float32)
    o_ref[...] = z.astype(o_ref.dtype)


# ---------------------------------------------------------------------------
# One conv (or conv-transpose) stage: conv -> BN(+bias) -> activation (+residual)
# ---------------------------------------------------------------------------
def conv_bn_act(x, w, gamma=None, beta=None, *, bias=None, stride=1,
                transposed=False, act="leaky", residual=None,
                out_dtype=jnp.bfloat16):
    """x: (N, H, W, C_pad) NHWC activation (pad channels hold zeros).
    w: (3, 3, Cin, Cout) weight of the equivalent forward conv (HWIO).
    Returns (N, H_out, W_out, Cout_pad)."""
    _, _, cin, cout = w.shape
    coutp = _rup(cout, LANE)
    n = x.shape[0]
    x = x[..., :cin].astype(jnp.bfloat16)                     # drop channel padding

    if transposed and stride == 2:
        # ConvTranspose2d(k=3, s=2, p=1, op=1): zero-dilate by 2, pad (1,2),(1,2),
        # then a stride-1 valid 3x3 conv.
        # TODO(synk): replace zero-dilation with a 4-phase sub-pixel decomposition
        # to avoid the 4x matmul work on inserted zeros.
        xp = jax.lax.pad(x, jnp.zeros((), x.dtype),
                         ((0, 0, 0), (1, 2, 1), (1, 2, 1), (0, 0, 0)))
        w_taps = w.reshape(9, cin, cout)
        kk = 3
    elif stride == 2:
        # stride-2 3x3 conv  ==  space-to-depth(2) + stride-1 2x2 conv.
        xpad = jnp.pad(x, ((0, 0), (1, 1), (1, 1), (0, 0)))
        hp0, wp0 = xpad.shape[1], xpad.shape[2]
        xp = xpad.reshape(n, hp0 // 2, 2, wp0 // 2, 2, cin)
        xp = xp.transpose(0, 1, 3, 2, 4, 5).reshape(n, hp0 // 2, wp0 // 2, 4 * cin)
        wz = jnp.pad(w, ((0, 1), (0, 1), (0, 0), (0, 0)))     # (4,4,Cin,Cout)
        wz = wz.reshape(2, 2, 2, 2, cin, cout).transpose(0, 2, 1, 3, 4, 5)
        w_taps = wz.reshape(4, 4 * cin, cout)
        cin = 4 * cin
        kk = 2
    else:
        # stride-1 3x3 conv (also ConvTranspose2d(k=3, s=1, p=1) with pre-flipped w).
        xp = jnp.pad(x, ((0, 0), (1, 1), (1, 1), (0, 0)))
        w_taps = w.reshape(9, cin, cout)
        kk = 3

    hp, wp = xp.shape[1], xp.shape[2]
    hout, wout = hp - kk + 1, wp - kk + 1
    rows = hout * wp
    lp = hp * wp + (kk - 1)

    x_flat = jnp.pad(xp.reshape(n, hp * wp, cin), ((0, 0), (0, kk - 1), (0, 0)))
    w_taps = jnp.pad(w_taps, ((0, 0), (0, 0), (0, coutp - cout))).astype(jnp.bfloat16)

    col = np.arange(rows) % wp
    mask = jnp.asarray((col < wout).astype(np.float32).reshape(rows, 1))
    offsets = tuple(dy * wp + dx for dy in range(kk) for dx in range(kk))

    # ---- pass 1: conv + per-image BN partial sums ---------------------------
    y, s1, s2 = pl.pallas_call(
        functools.partial(_conv_stats_kernel, tap_offsets=offsets),
        grid=(n,),
        in_specs=[
            pl.BlockSpec((None, lp, cin), lambda i: (i, 0, 0)),
            pl.BlockSpec((kk * kk, cin, coutp), lambda i: (0, 0, 0)),
            pl.BlockSpec((rows, 1), lambda i: (0, 0)),
        ],
        out_specs=(
            pl.BlockSpec((None, rows, coutp), lambda i: (i, 0, 0)),
            pl.BlockSpec((None, 1, coutp), lambda i: (i, 0, 0)),
            pl.BlockSpec((None, 1, coutp), lambda i: (i, 0, 0)),
        ),
        out_shape=(
            jax.ShapeDtypeStruct((n, rows, coutp), jnp.bfloat16),
            jax.ShapeDtypeStruct((n, 1, coutp), jnp.float32),
            jax.ShapeDtypeStruct((n, 1, coutp), jnp.float32),
        ),
        compiler_params=pltpu.CompilerParams(
            dimension_semantics=("parallel",),
            vmem_limit_bytes=VMEM_LIMIT,
        ),
    )(x_flat, w_taps, mask)

    # ---- glue: finalize BatchNorm batch statistics, fold into scale/shift ----
    cnt = float(n * hout * wout)
    mean = jnp.sum(s1, axis=0)[0] / cnt                       # (coutp,)
    var = jnp.maximum(jnp.sum(s2, axis=0)[0] / cnt - mean * mean, 0.0)
    if gamma is not None:
        g = jnp.pad(gamma.astype(jnp.float32), (0, coutp - cout))
        b = jnp.pad(beta.astype(jnp.float32), (0, coutp - cout))
        scale = g * jax.lax.rsqrt(var + EPS)
        shift = b - mean * scale
    else:
        scale = jnp.ones((coutp,), jnp.float32)
        if bias is not None:
            shift = jnp.pad(bias.astype(jnp.float32), (0, coutp - cout))
        else:
            shift = jnp.zeros((coutp,), jnp.float32)
    scale = scale.reshape(1, coutp)
    shift = shift.reshape(1, coutp)

    # ---- pass 2: scale/shift + activation (+ residual), lane-dense output ----
    y4 = y.reshape(n, hout, wp, coutp)
    th = _row_tile(hout, wp * coutp)
    grid2 = (n, hout // th)
    cparams = pltpu.CompilerParams(
        dimension_semantics=("parallel", "parallel"),
        vmem_limit_bytes=VMEM_LIMIT,
    )
    base_specs = [
        pl.BlockSpec((None, th, wp, coutp), lambda i, j: (i, j, 0, 0)),
        pl.BlockSpec((1, coutp), lambda i, j: (0, 0)),
        pl.BlockSpec((1, coutp), lambda i, j: (0, 0)),
    ]
    out_spec = pl.BlockSpec((None, th, wout, coutp), lambda i, j: (i, j, 0, 0))
    out_shape = jax.ShapeDtypeStruct((n, hout, wout, coutp), out_dtype)

    if residual is not None:
        res = residual.astype(jnp.bfloat16)
        assert res.shape == (n, hout, wout, coutp), (res.shape, (n, hout, wout, coutp))
        out = pl.pallas_call(
            functools.partial(_affine_act_res_kernel, act=act),
            grid=grid2,
            in_specs=base_specs + [
                pl.BlockSpec((None, th, wout, coutp), lambda i, j: (i, j, 0, 0)),
            ],
            out_specs=out_spec,
            out_shape=out_shape,
            compiler_params=cparams,
        )(y4, scale, shift, res)
    else:
        out = pl.pallas_call(
            functools.partial(_affine_act_kernel, act=act),
            grid=grid2,
            in_specs=base_specs,
            out_specs=out_spec,
            out_shape=out_shape,
            compiler_params=cparams,
        )(y4, scale, shift)
    return out


# ---------------------------------------------------------------------------
# Network blocks (Residual / Residual_enc / Residual_dec / Generator)
# ---------------------------------------------------------------------------
def residual_block(x, p):
    h = conv_bn_act(x, p["c1_w"], p["c1_g"], p["c1_b"])
    h = conv_bn_act(h, p["c2_w"], p["c2_g"], p["c2_b"])
    # x + LeakyReLU(BN(conv3(.)))  -- residual add fused into pass 2
    h = conv_bn_act(h, p["c3_w"], p["c3_g"], p["c3_b"], residual=x)
    return h


def residual_enc(x, p):
    h = conv_bn_act(x, p["c0_w"], p["c0_g"], p["c0_b"], stride=2)
    h = residual_block(h, p["res"])
    h = conv_bn_act(h, p["c4_w"], p["c4_g"], p["c4_b"])
    return h


def residual_dec(x, p, skip=None):
    h = conv_bn_act(x, p["c0_w"], p["c0_g"], p["c0_b"], transposed=True)
    h = residual_block(h, p["res"])
    # encoder skip (x_d + x_e) fused into the last stage's pass-2 epilogue
    h = conv_bn_act(h, p["c4_w"], p["c4_g"], p["c4_b"], stride=2, transposed=True,
                    residual=skip)
    return h


def generator_forward(x_nchw, params):
    n, c_in, _, _ = x_nchw.shape
    x = jnp.transpose(x_nchw, (0, 2, 3, 1))                   # NCHW -> NHWC
    cp_in = _rup(c_in, LANE)
    x_pad = jnp.pad(x, ((0, 0), (0, 0), (0, 0), (0, cp_in - c_in))).astype(jnp.bfloat16)

    e0 = residual_enc(x_pad, params["e0"])
    e1 = residual_enc(e0, params["e1"])
    e2 = residual_enc(e1, params["e2"])
    e3 = residual_enc(e2, params["e3"])

    d3 = residual_dec(e3, params["d3"], skip=e2)              # d3(e3) + e2
    d2 = residual_dec(d3, params["d2"], skip=e1)              # d2(.) + e1
    d1 = residual_dec(d2, params["d1"], skip=e0)              # d1(.) + e0
    d0 = residual_dec(d1, params["d0"])

    # dd: Conv2d(nb, 2, 3, pad=1, bias=True) + Tanh, then `out + x` (fused residual)
    out = conv_bn_act(d0, params["dd_w"], bias=params["dd_b"], act="tanh",
                      residual=x_pad, out_dtype=jnp.float32)
    out = out[..., :c_in]
    return jnp.transpose(out, (0, 3, 1, 2))                   # NHWC -> NCHW
    # TODO(synk): BatchNorm running_mean/running_var tracking (train-state side
    # effect) is not reproduced; this is a forward-only, batch-statistics port.


# ---------------------------------------------------------------------------
# Parameter initialisation (weights stored in forward-conv HWIO form; a real
# ConvTranspose2d checkpoint would need a spatial flip + in/out transpose).
# ---------------------------------------------------------------------------
def _conv_bn(key, cin, cout):
    kw, kg, kb = jax.random.split(key, 3)
    w = 0.1 * jax.random.normal(kw, (3, 3, cin, cout), jnp.float32)
    g = 1.0 + 0.05 * jax.random.normal(kg, (cout,), jnp.float32)
    b = 0.05 * jax.random.normal(kb, (cout,), jnp.float32)
    return w, g, b


def _res_params(key, chan):
    k1, k2, k3 = jax.random.split(key, 3)
    p = {}
    p["c1_w"], p["c1_g"], p["c1_b"] = _conv_bn(k1, chan, chan)
    p["c2_w"], p["c2_g"], p["c2_b"] = _conv_bn(k2, chan, chan // 2)
    p["c3_w"], p["c3_g"], p["c3_b"] = _conv_bn(k3, chan // 2, chan)
    return p


def _block_params(key, cin, chan):
    k0, kr, k4 = jax.random.split(key, 3)
    p = {}
    p["c0_w"], p["c0_g"], p["c0_b"] = _conv_bn(k0, cin, chan)
    p["res"] = _res_params(kr, chan)
    p["c4_w"], p["c4_g"], p["c4_b"] = _conv_bn(k4, chan, chan)
    return p


def init_generator_params(key, nb=NB_FILTERS):
    ks = jax.random.split(key, 10)
    p = {}
    p["e0"] = _block_params(ks[0], 2, nb)
    p["e1"] = _block_params(ks[1], nb, nb * 2)
    p["e2"] = _block_params(ks[2], nb * 2, nb * 4)
    p["e3"] = _block_params(ks[3], nb * 4, nb * 8)
    p["d3"] = _block_params(ks[4], nb * 8, nb * 4)
    p["d2"] = _block_params(ks[5], nb * 4, nb * 2)
    p["d1"] = _block_params(ks[6], nb * 2, nb)
    p["d0"] = _block_params(ks[7], nb, nb)
    p["dd_w"] = 0.1 * jax.random.normal(ks[8], (3, 3, nb, 2), jnp.float32)
    p["dd_b"] = 0.05 * jax.random.normal(ks[9], (2,), jnp.float32)
    return p


if __name__ == "__main__":
    key = jax.random.PRNGKey(0)
    nb = 16                       # scaled-down NB_FILTERS for a fast smoke test
    n, c, h, w = 2, 2, 16, 16     # Generator input: 2 channels, 16x16 spatial

    kx, kp = jax.random.split(key)
    x = jax.random.normal(kx, (n, c, h, w), jnp.float32)      # NCHW, like PyTorch
    params = init_generator_params(kp, nb)

    out = generator_forward(x, params)
    out = jax.block_until_ready(out)

    assert out.shape == (n, c, h, w), out.shape
    assert bool(jnp.all(jnp.isfinite(out)))
    print("KERNEL_OK")
</pallas_src>

<mosaic_0001>
module attributes {stable_mosaic.version = 11 : i64} {
  func.func @_conv_stats_kernel(%arg0: i32, %arg1: memref<1x82x8xbf16, #tpu.memory_space<vmem>>, %arg2: memref<4x8x128xbf16, #tpu.memory_space<vmem>>, %arg3: memref<72x1xf32, #tpu.memory_space<vmem>>, %arg4: memref<1x72x128xbf16, #tpu.memory_space<vmem>>, %arg5: memref<1x1x128xf32, #tpu.memory_space<vmem>>, %arg6: memref<1x1x128xf32, #tpu.memory_space<vmem>>) attributes {dimension_semantics = [#tpu.dimension_semantics<parallel>], iteration_bounds = array<i64: 2>, scalar_prefetch = 0 : i64, scratch_operands = 0 : i64, tpu.core_type = #tpu.core_type<tc>, window_params = [{transform_indices = @transform_0, window_bounds = array<i64: 1, 82, 8>}, {pipeline_mode = #tpu.pipeline_mode<synchronous>, transform_indices = @transform_1, window_bounds = array<i64: 4, 8, 128>}, {pipeline_mode = #tpu.pipeline_mode<synchronous>, transform_indices = @transform_2, window_bounds = array<i64: 72, 1>}, {transform_indices = @transform_3, window_bounds = array<i64: 1, 72, 128>}, {transform_indices = @transform_4, window_bounds = array<i64: 1, 1, 128>}, {transform_indices = @transform_5, window_bounds = array<i64: 1, 1, 128>}]} {
    %c0 = arith.constant 0 : index
    %c0_0 = arith.constant 0 : index
    %c0_1 = arith.constant 0 : index
    %0 = vector.load %arg1[%c0, %c0_0, %c0_1] : memref<1x82x8xbf16, #tpu.memory_space<vmem>>, vector<1x72x8xbf16>
    %1 = vector.shape_cast %0 : vector<1x72x8xbf16> to vector<72x8xbf16>
    %c0_2 = arith.constant 0 : index
    %c0_3 = arith.constant 0 : index
    %c0_4 = arith.constant 0 : index
    %2 = vector.load %arg2[%c0_2, %c0_3, %c0_4] : memref<4x8x128xbf16, #tpu.memory_space<vmem>>, vector<1x8x128xbf16>
    %3 = vector.shape_cast %2 : vector<1x8x128xbf16> to vector<8x128xbf16>
    %cst = arith.constant dense<0.000000e+00> : vector<72x128xf32>
    %4 = tpu.matmul %1, %3, %cst {dimension_numbers = #tpu.dot_dimension_numbers<[1], [0], [0], [1], [0, 0, 1, 1], [], []>} : vector<72x8xbf16>, vector<8x128xbf16>, vector<72x128xf32> -> vector<72x128xf32>
    %c0_5 = arith.constant 0 : index
    %c1 = arith.constant 1 : index
    %c0_6 = arith.constant 0 : index
    %5 = vector.load %arg1[%c0_5, %c1, %c0_6] : memref<1x82x8xbf16, #tpu.memory_space<vmem>>, vector<1x72x8xbf16>
    %6 = vector.shape_cast %5 : vector<1x72x8xbf16> to vector<72x8xbf16>
    %c1_7 = arith.constant 1 : index
    %c0_8 = arith.constant 0 : index
    %c0_9 = arith.constant 0 : index
    %7 = vector.load %arg2[%c1_7, %c0_8, %c0_9] : memref<4x8x128xbf16, #tpu.memory_space<vmem>>, vector<1x8x128xbf16>
    %8 = vector.shape_cast %7 : vector<1x8x128xbf16> to vector<8x128xbf16>
    %cst_10 = arith.constant dense<0.000000e+00> : vector<72x128xf32>
    %9 = tpu.matmul %6, %8, %cst_10 {dimension_numbers = #tpu.dot_dimension_numbers<[1], [0], [0], [1], [0, 0, 1, 1], [], []>} : vector<72x8xbf16>, vector<8x128xbf16>, vector<72x128xf32> -> vector<72x128xf32>
    %10 = arith.addf %4, %9 : vector<72x128xf32>
    %c0_11 = arith.constant 0 : index
    %c9 = arith.constant 9 : index
    %c0_12 = arith.constant 0 : index
    %11 = vector.load %arg1[%c0_11, %c9, %c0_12] : memref<1x82x8xbf16, #tpu.memory_space<vmem>>, vector<1x72x8xbf16>
    %12 = vector.shape_cast %11 : vector<1x72x8xbf16> to vector<72x8xbf16>
    %c2 = arith.constant 2 : index
    %c0_13 = arith.constant 0 : index
    %c0_14 = arith.constant 0 : index
    %13 = vector.load %arg2[%c2, %c0_13, %c0_14] : memref<4x8x128xbf16, #tpu.memory_space<vmem>>, vector<1x8x128xbf16>
    %14 = vector.shape_cast %13 : vector<1x8x128xbf16> to vector<8x128xbf16>
    %cst_15 = arith.constant dense<0.000000e+00> : vector<72x128xf32>
    %15 = tpu.matmul %12, %14, %cst_15 {dimension_numbers = #tpu.dot_dimension_numbers<[1], [0], [0], [1], [0, 0, 1, 1], [], []>} : vector<72x8xbf16>, vector<8x128xbf16>, vector<72x128xf32> -> vector<72x128xf32>
    %16 = arith.addf %10, %15 : vector<72x128xf32>
    %c0_16 = arith.constant 0 : index
    %c10 = arith.constant 10 : index
    %c0_17 = arith.constant 0 : index
    %17 = vector.load %arg1[%c0_16, %c10, %c0_17] : memref<1x82x8xbf16, #tpu.memory_space<vmem>>, vector<1x72x8xbf16>
    %18 = vector.shape_cast %17 : vector<1x72x8xbf16> to vector<72x8xbf16>
    %c3 = arith.constant 3 : index
    %c0_18 = arith.constant 0 : index
    %c0_19 = arith.constant 0 : index
    %19 = vector.load %arg2[%c3, %c0_18, %c0_19] : memref<4x8x128xbf16, #tpu.memory_space<vmem>>, vector<1x8x128xbf16>
    %20 = vector.shape_cast %19 : vector<1x8x128xbf16> to vector<8x128xbf16>
    %cst_20 = arith.constant dense<0.000000e+00> : vector<72x128xf32>
    %21 = tpu.matmul %18, %20, %cst_20 {dimension_numbers = #tpu.dot_dimension_numbers<[1], [0], [0], [1], [0, 0, 1, 1], [], []>} : vector<72x8xbf16>, vector<8x128xbf16>, vector<72x128xf32> -> vector<72x128xf32>
    %22 = arith.addf %16, %21 : vector<72x128xf32>
    %c0_21 = arith.constant 0 : index
    %c0_22 = arith.constant 0 : index
    %23 = vector.load %arg3[%c0_21, %c0_22] : memref<72x1xf32, #tpu.memory_space<vmem>>, vector<72x1xf32>
    %24 = vector.broadcast %23 : vector<72x1xf32> to vector<72x128xf32>
    %25 = arith.mulf %22, %24 : vector<72x128xf32>
    %26 = arith.truncf %25 : vector<72x128xf32> to vector<72x128xbf16>
    %c0_23 = arith.constant 0 : index
    %c0_24 = arith.constant 0 : index
    %c0_25 = arith.constant 0 : index
    %27 = vector.load %arg4[%c0_23, %c0_24, %c0_25] : memref<1x72x128xbf16, #tpu.memory_space<vmem>>, vector<1x72x128xbf16>
    %28 = vector.shape_cast %27 : vector<1x72x128xbf16> to vector<72x128xbf16>
    %29 = vector.shape_cast %26 : vector<72x128xbf16> to vector<1x72x128xbf16>
    tpu.vector_store %arg4[%c0_23, %c0_24, %c0_25], %29 {strides = array<i32>} : memref<1x72x128xbf16, #tpu.memory_space<vmem>>, vector<1x72x128xbf16>,
    %cst_26 = arith.constant dense<0.000000e+00> : vector<128xf32>
    %30 = vector.multi_reduction <add>, %25, %cst_26 [0] : vector<72x128xf32> to vector<128xf32>
    %31 = vector.shape_cast %30 : vector<128xf32> to vector<1x128xf32>
    %c0_27 = arith.constant 0 : index
    %c0_28 = arith.constant 0 : index
    %c0_29 = arith.constant 0 : index
    %32 = vector.load %arg5[%c0_27, %c0_28, %c0_29] : memref<1x1x128xf32, #tpu.memory_space<vmem>>, vector<1x1x128xf32>
    %33 = vector.shape_cast %32 : vector<1x1x128xf32> to vector<1x128xf32>
    %34 = vector.shape_cast %31 : vector<1x128xf32> to vector<1x1x128xf32>
    tpu.vector_store %arg5[%c0_27, %c0_28, %c0_29], %34 {strides = array<i32>} : memref<1x1x128xf32, #tpu.memory_space<vmem>>, vector<1x1x128xf32>,
    %35 = arith.mulf %25, %25 : vector<72x128xf32>
    %cst_30 = arith.constant dense<0.000000e+00> : vector<128xf32>
    %36 = vector.multi_reduction <add>, %35, %cst_30 [0] : vector<72x128xf32> to vector<128xf32>
    %37 = vector.shape_cast %36 : vector<128xf32> to vector<1x128xf32>
    %c0_31 = arith.constant 0 : index
    %c0_32 = arith.constant 0 : index
    %c0_33 = arith.constant 0 : index
    %38 = vector.load %arg6[%c0_31, %c0_32, %c0_33] : memref<1x1x128xf32, #tpu.memory_space<vmem>>, vector<1x1x128xf32>
    %39 = vector.shape_cast %38 : vector<1x1x128xf32> to vector<1x128xf32>
    %40 = vector.shape_cast %37 : vector<1x128xf32> to vector<1x1x128xf32>
    tpu.vector_store %arg6[%c0_31, %c0_32, %c0_33], %40 {strides = array<i32>} : memref<1x1x128xf32, #tpu.memory_space<vmem>>, vector<1x1x128xf32>,
    return
  }
  func.func @transform_0(%arg0: i32) -> (i32, i32, i32) {
    %c0_i32 = arith.constant 0 : i32
    %c0_i32_0 = arith.constant 0 : i32
    %c0_i32_1 = arith.constant 0 : i32
    return %arg0, %c0_i32, %c0_i32_0 : i32, i32, i32
  }
  func.func @transform_1(%arg0: i32) -> (i32, i32, i32) {
    %c0_i32 = arith.constant 0 : i32
    %c0_i32_0 = arith.constant 0 : i32
    %c0_i32_1 = arith.constant 0 : i32
    %c0_i32_2 = arith.constant 0 : i32
    return %c0_i32, %c0_i32_0, %c0_i32_1 : i32, i32, i32
  }
  func.func @transform_2(%arg0: i32) -> (i32, i32) {
    %c0_i32 = arith.constant 0 : i32
    %c0_i32_0 = arith.constant 0 : i32
    %c0_i32_1 = arith.constant 0 : i32
    return %c0_i32, %c0_i32_0 : i32, i32
  }
  func.func @transform_3(%arg0: i32) -> (i32, i32, i32) {
    %c0_i32 = arith.constant 0 : i32
    %c0_i32_0 = arith.constant 0 : i32
    %c0_i32_1 = arith.constant 0 : i32
    return %arg0, %c0_i32, %c0_i32_0 : i32, i32, i32
  }
  func.func @transform_4(%arg0: i32) -> (i32, i32, i32) {
    %c0_i32 = arith.constant 0 : i32
    %c0_i32_0 = arith.constant 0 : i32
    %c0_i32_1 = arith.constant 0 : i32
    return %arg0, %c0_i32, %c0_i32_0 : i32, i32, i32
  }
  func.func @transform_5(%arg0: i32) -> (i32, i32, i32) {
    %c0_i32 = arith.constant 0 : i32
    %c0_i32_0 = arith.constant 0 : i32
    %c0_i32_1 = arith.constant 0 : i32
    return %arg0, %c0_i32, %c0_i32_0 : i32, i32, i32
  }
}

</mosaic_0001>

<bundles_post_ra>
// kernel: tpu_custom_call.1
= control target key start
LH: loop header
LB: loop body
LE: loop exit
PB: predicated region body
PF: predicated region fallthrough
CT: control target
= control target key end

     0   :  { %11 = vsyncpa [#allocation3], 0  ;;  %s1942_s0 = inlined_call_operand.vmem [shape: bf16[2,82,8], index: 0, kind: input, shape index: {}]   ;;  %s1943_s1 = inlined_call_operand.vmem [shape: bf16[4,8,128], index: 1, kind: input, shape index: {}]   ;;  %s1944_s2 = inlined_call_operand.vmem [shape: f32[72,1], index: 2, kind: input, shape index: {}]   ;;  %s1945_s3 = inlined_call_operand.hbm [shape: bf16[2,72,128], index: 3, kind: output, shape index: {0}]   ;;  %s1946_s4 = inlined_call_operand.hbm [shape: f32[2,1,128], index: 4, kind: output, shape index: {1}]   ;;  %s1947_s5 = inlined_call_operand.hbm [shape: f32[2,1,128], index: 5, kind: output, shape index: {2}]  }
   0x1   :  { %13 = vsyncpa [#allocation3 + $0x1], 0 }
   0x2   :  { %14 = vsyncpa [#allocation5], 0 }
   0x3   :  { %16 = vsyncpa [#allocation5 + $0x1], 0  ;;  %s1578_s18 = smov 0   ;;  %s1580_s19 = smov 0  }
   0x4   :  { %s1582_s20 = smov 0   ;;  %s1584_s21 = smov 0  }
   0x5 LB: > { %s1599_s22 = sadd.s32 4294967295, %s1538_s21   ;;  %s1098_s23 = sadd.s32 4294967294, %s1538_s21   ;;  %s1538_s21 = sphi %s1584_s21, %s1953_s21   ;;  %s1534_s20 = sphi %s1582_s20, %s1952_s20   ;;  %s1530_s19 = sphi %s1580_s19, %s1951_s19   ;;  %s1526_s18 = sphi %s1578_s18, %s1950_s18  }
   0x6   : > { %s1603_s24 = sadd.s32 1, %s1538_s21   ;;  %s97_s25 = sadd.s32 1, %s1534_s20 }
   0x7   : > { %s94_s26 = ssub.s32 %s1538_s21, %s1603_s24  ;;  %p107_p0 = scmp.ne.s32.totalorder %s1534_s20, %s1530_s19 }
   0x8   : > { %p95_p1 = scmp.eq.s32.totalorder %s94_s26, 0  ;;  %p108_p2 = scmp.eq.s32.totalorder %s1599_s22, 1 }
   0x9   : > { %p113_p3 = scmp.ne.s32.totalorder %s1530_s19, %s1526_s18  ;;  %p114_p4 = scmp.eq.s32.totalorder %s1098_s23, 1 }
   0xa   : > { %s1616_s27 = scalar_select %p95_p1, %s1534_s20, %s97_s25  }
   0xb   : > { %p1618_p5 = por %p108_p2, %p107_p0  ;;  %p1622_p6 = por %p114_p4, %p113_p3 }
   0xc   : > { %p1101_p7 = scmp.ge.s32.totalorder %s1538_s21, 1  ;;  %p198_p8 = scmp.lt.s32.totalorder %s1538_s21, 3 }
   0xe   : > { %p199_p9 = pnand %p1101_p7, %p198_p8 }
   0xf   : > { %v1103_v0 = vld [vmem:[%s1943_s1 + $0x4] sm:$0xf] (!%p199_p9)  ;;  %vm334_vm0 = vcmask (!%p199_p9), 1043456   ;;  %v1120_v1 = vld [vmem:[%s1943_s1 + $0x8] sm:$0xf] (!%p199_p9)  ;;  %v1540_v2 = vmov (!%p199_p9), 0.0  }
  0x10   : > { %202 = sbr.rel (%p199_p9) target bundleno = 393 (0x189), region = 32  ;;  %1208 = vmatprep.subr.bf16.mxu1 (!%p199_p9), %v1540_v2  ;;  %1252 = vmatprep.subr.bf16.mxu0 (!%p199_p9), %v1540_v2  ;;  %v336_v3 = vsel (!%p199_p9), %vm334_vm0, %v1103_v0, 0  ;;  %v589_v4 = vsel (!%p199_p9), %vm334_vm0, %v1120_v1, 0  ;;  %p234_p10 = scmp.lt.s32.totalorder (!%p199_p9), %s1599_s22, 1  ;;  %vm1541_vm1 = vmmov (!%p199_p9), 0   ;;  %v787_v5 = vld [vmem:[%s1944_s2] sm:$0xff] (!%p199_p9) }
  0x11   : > { %1209 = vmatpush3.bf16.msra.mxu1 (!%p199_p9), %v336_v3  ;;  %1253 = vmatpush3.bf16.msra.mxu0 (!%p199_p9), %v589_v4  ;;  %v789_v6 = vld [vmem:[%s1944_s2 + $0x10] sm:$0xff] (!%p199_p9)  ;;  %v1542_v7 = vmov (!%p199_p9), 0   ;;  %v788_v8 = vld [vmem:[%s1944_s2 + $0x8] sm:$0xff] (!%p199_p9)  ;;  %v790_v9 = vld [vmem:[%s1944_s2 + $0x18] sm:$0xff] (!%p199_p9)  ;;  %vm278_vm2 = vsmask.f32 (!%p199_p9), 7424 }
  0x12   : > { %1210 = vmatprep.mubr.msk.bf16.mxu1 (!%p199_p9), %vm1541_vm1, %v1540_v2  ;;  %1230 = vmatprep.subr.bf16.mxu1 (!%p199_p9), %v1540_v2  ;;  %v791_v12 = vld [vmem:[%s1944_s2 + $0x20] sm:$0xff] (!%p199_p9)  ;;  %v792_v13 = vld [vmem:[%s1944_s2 + $0x28] sm:$0xff] (!%p199_p9)  ;;  %vm318_vm3 = vcmask (!%p199_p9), 64512   ;;  %v793_v31 = vld [vmem:[%s1944_s2 + $0x30] sm:$0xff] (!%p199_p9)  ;;  %vm678_vm4 = vcmask (!%p199_p9), 1046528   ;;  %s1543_s16 = smov (!%p199_p9), [#allocation2]  }
  0x13   : > { %1254 = vmatprep.mubr.msk.bf16.mxu0 (!%p199_p9), %vm1541_vm1, %v1540_v2  ;;  %1274 = vmatprep.subr.bf16.mxu0 (!%p199_p9), %v1540_v2  ;;  %v249_v19 = vld [vmem:[%s1943_s1] sm:$0xf] (!%p199_p9)  ;;  %v1131_v27 = vld [vmem:[%s1943_s1 + $0xc] sm:$0xf] (!%p199_p9)  ;;  %v794_v41 = vld [vmem:[%s1944_s2 + $0x38] sm:$0xff] (!%p199_p9)  ;;  %s1420_s25 = sshll.u32 (!%p199_p9), %s1543_s16, 4  ;;  %s1421_s25 = int_to_ptr.vmem [resolvable:$false] %s1420_s25 }
  0x14   : > { %1402 = vset.pattern.permute.xlu0 (!%p199_p9), %v1542_v7  ;;  %1403 = vset.pattern.permute.xlu1 (!%p199_p9), %v1542_v7  ;;  %v423_v35 = vsel (!%p199_p9), %vm334_vm0, %v249_v19, 0  ;;  %v704_v42 = vsel (!%p199_p9), %vm334_vm0, %v1131_v27, 0  ;;  %v795_v43 = vld [vmem:[%s1944_s2 + $0x40] sm:$0xff] (!%p199_p9)  ;;  %s1422_s26 = scalar_lea.vmem (!%p199_p9), %s1421_s25, 1152 }
  0x15   : > { %798 = vperm.xlu0 (!%p199_p9), %1402, %v787_v5   ;;  %808 = vperm.xlu1 (!%p199_p9), %1403, %v789_v6  }
  0x17   : > { %s235_s9 = scalar_select %p234_p10, %s1599_s22, 1 }
  0x19   : > { %s1346_s14 = smul.u32 44, %s235_s9  ;;  %803 = vperm.xlu0 %1402, %v788_v8   ;;  %813 = vperm.xlu1 %1403, %v790_v9  }
  0x1a   : > { %s1347_s9 = smul.u32 576, %s1599_s22 }
  0x1b   : > { %s1655_s17 = scalar_lea.vmem %s1942_s0, %s1346_s14 }
  0x1c   : > { %v1664_v10 = vld [vmem:[%s1655_s17] sm:$0xff]   ;;  %v1667_v11 = vld [vmem:[%s1655_s17 + $0x8] sm:$0xff]   ;;  %v1690_v22 = vld [vmem:[%s1655_s17 + $0x10] sm:$0xff]   ;;  %s1828_s13 = scalar_lea.hbm %s1945_s3, %s1347_s9 }
  0x1d   : > { %v497_v14 = vld [vmem:[%s1655_s17 + $0x4] sm:$0xf]  ;;  %v1677_v15 = vld [vmem:[%s1655_s17 + $0x8] sm:$0xf]  ;;  %v280_v16 = vshrl.u32 %v1664_v10, 16  ;;  %v282_v17 = vshll.u32 %v1664_v10, 16  ;;  %818 = vperm.xlu0 %1402, %v791_v12   ;;  %823 = vperm.xlu1 %1403, %v792_v13  }
  0x1e   : > { %v287_v18 = vshll.u32 %v1667_v11, 16  ;;  %v1121_v20 = vcombine.low %v497_v14, %v1677_v15  ;;  %v1687_v21 = vld [vmem:[%s1655_s17 + $0xc] sm:$0xff]   ;;  %v291_v29 = vshrl.u32 %v1667_v11, 16  ;;  %v1698_v30 = vld [vmem:[%s1655_s17 + $0x14] sm:$0xff]   ;;  %v295_v34 = vshll.u32 %v1690_v22, 16  ;;  %v1726_v50 = vld [vmem:[%s1655_s17 + $0x1c] sm:$0xff]  }
  0x1f   : > { %v284_v23 = vrot.slane %v282_v17, 1  ;;  %v542_v28 = vshll.u32 %v1687_v21, 16  ;;  %v546_v39 = vshrl.u32 %v1687_v21, 16  ;;  %v550_v40 = vshll.u32 %v1698_v30, 16  ;;  %v1720_v47 = vld [vmem:[%s1655_s17 + $0x18] sm:$0xff]  }
  0x20   : > { %v289_v24 = vrot.slane %v287_v18, 1  ;;  %v535_v25 = vshrl.u32 %v1121_v20, 16  ;;  %v537_v26 = vshll.u32 %v1121_v20, 16  ;;  %v297_v46 = vrot.slane %v295_v34, 1  ;;  %v1732_v54 = vld [vmem:[%s1655_s17 + $0x20] sm:$0xf] }
  0x21   : > { %v285_v32 = vor.u32 %v284_v23, %v280_v16  ;;  %v544_v36 = vrot.slane %v542_v28, 1  ;;  %828 = vperm.xlu0 %1402, %v793_v31   ;;  %833 = vperm.xlu1 %1403, %v794_v41   ;;  %v552_v49 = vrot.slane %v550_v40, 1  ;;  %v299_v52 = vshrl.u32 %v1690_v22, 16  ;;  %v250_v55 = vld [vmem:[%s1655_s17 + $0x24] sm:$0x1] }
  0x22   : > { %v539_v33 = vrot.slane %v537_v26, 1  ;;  %v293_v45 = vor.u32 %v291_v29, %v289_v24  ;;  %v303_v53 = vshll.u32 %v1720_v47, 16  ;;  %v554_v57 = vshrl.u32 %v1698_v30, 16  ;;  %v1413_v0 = vld [vmem:[%s1655_s17 + $0x24] sm:$0x1f]  }
  0x23   : > { %v290_v37 = vsel %vm278_vm2, %v285_v32, %v289_v24  ;;  %v548_v48 = vor.u32 %v546_v39, %v544_v36  ;;  %v558_v58 = vshll.u32 %v1726_v50, 16  ;;  %v301_v59 = vor.u32 %v299_v52, %v297_v46  ;;  %v672_v20 = vld [vmem:[%s1655_s17 + $0x4] sm:$0xe]  ;;  %s1812_s17 = sand.u32 1, %s1530_s19  }
  0x24   : > { %v540_v38 = vor.u32 %v539_v33, %v535_v25  ;;  %1211 = vmatmul.mubr.msk.bf16.vlgmr.msra.gmra.mrb[0].mxu1 %vm318_vm3, %v290_v37  ;;  %v298_v51 = vsel %vm278_vm2, %v293_v45, %v297_v46  ;;  %v305_v60 = vrot.slane %v303_v53, 1  ;;  %v1108_v61 = vcombine.low %v1732_v54, %v250_v55  ;;  %s1345_s7 = smul.u32 36, %s1812_s17  ;;  %s936_s14 = scalar_lea.sflag [#allocation3], %s1812_s17 }
  0x25   : > { %1231 = vmatpush3.bf16.msra.mxu1 %v423_v35  ;;  %1214 = vmatprep.mubr.msk.bf16.mxu1 %vm1541_vm1, %v1540_v2  ;;  %v553_v56 = vsel %vm278_vm2, %v548_v48, %v552_v49  ;;  %v556_v62 = vor.u32 %v554_v57, %v552_v49  ;;  %v560_v63 = vrot.slane %v558_v58, 1  ;;  %v307_v3 = vshrl.u32 %v1720_v47, 16 }
  0x26   : > { %v545_v44 = vsel %vm278_vm2, %v540_v38, %v544_v36  ;;  %838 = vperm.xlu0 %1402, %v795_v43   ;;  %v306_v1 = vsel %vm278_vm2, %v301_v59, %v305_v60  ;;  %v311_v4 = vshll.u32 %v1108_v61, 16  ;;  %v562_v6 = vshrl.u32 %v1726_v50, 16  ;;  %s1815_s8 = scalar_lea.vmem [#allocation2], %s1345_s7 }
  0x27   : > { %1255 = vmatmul.mubr.msk.bf16.vlgmr.msra.gmra.mrb[0].mxu0 %vm318_vm3, %v545_v44  ;;  %v561_v5 = vsel %vm278_vm2, %v556_v62, %v560_v63  ;;  %v566_v7 = vshll.u32 %v1413_v0, 16  ;;  %v309_v8 = vor.u32 %v307_v3, %v305_v60  ;;  %v315_v17 = vshrl.u32 %v1108_v61, 16  ;;  %s957_s10 = sshll.u32 %s1815_s8, 4  ;;  %s1823_s10 = int_to_ptr.vmem [resolvable:$true] %s957_s10 }
  0x28   : > { %1275 = vmatpush3.bf16.msra.mxu0 %v704_v42  ;;  %1258 = vmatprep.mubr.msk.bf16.mxu0 %vm1541_vm1, %v1540_v2  ;;  %v313_v9 = vrot.slane %v311_v4, 1  ;;  %v564_v12 = vor.u32 %v562_v6, %v560_v63  ;;  %v570_v18 = vshrl.u32 %v1413_v0, 16  ;;  %v1132_v24 = vcombine.low %v672_v20, %v1677_v15  ;;  %s1416_s15 = scalar_lea.vmem %s1823_s10, 576  ;;  %p1423_p0 = scmp.lt.s32.totalorder %s1823_s10, %s1421_s25 }
  0x29   : > { %v568_v13 = vrot.slane %v566_v7, 1  ;;  %v680_v26 = vrot.slane %v1687_v21, 1  ;;  %v682_v15 = vrot.slane %v1698_v30, 1  ;;  %p1417_p11 = scmp.ne.s32.totalorder %s1823_s10, %s1416_s15  ;;  %p1424_p1 = scmp.lt.s32.totalorder %s1422_s26, %s1416_s15 }
  0x2a   : > { %v314_v14 = vsel %vm278_vm2, %v309_v8, %v313_v9  ;;  %v317_v19 = vor.u32 %v315_v17, %v313_v9  ;;  %v679_v25 = vrot.slane %v1132_v24, 1 }
  0x2b   : > { %v569_v16 = vsel %vm278_vm2, %v564_v12, %v568_v13  ;;  %v572_v23 = vor.u32 %v570_v18, %v568_v13  ;;  %v683_v28 = vsel %vm678_vm4, %v680_v26, %v682_v15  ;;  %p1418_p12 = pnand %p1417_p11, %p1618_p5  ;;  %p1425_p2 = por %p1424_p1, %p1423_p0 }
  0x2c   : > { %1215 = vmatmul.mubr.msk.bf16.gmra.mrb[4].mxu1 %vm318_vm3, %v298_v51  ;;  %v681_v27 = vsel %vm678_vm4, %v679_v25, %v680_v26 }
  0x2d   : > { %1218 = vmatprep.mubr.msk.bf16.mxu1 %vm1541_vm1, %v1540_v2  ;;  %p1419_p13 = pneg %p1418_p12 }
  0x2f   : > { %1259 = vmatmul.mubr.msk.bf16.gmra.mrb[4].mxu0 %vm318_vm3, %v553_v56  ;;  %p1426_p3 = pnand %p1425_p2, %p1419_p13 }
  0x30   : > { %1262 = vmatprep.mubr.msk.bf16.mxu0 %vm1541_vm1, %v1540_v2 }
  0x34   : > { %1219 = vmatmul.mubr.msk.bf16.gmra.mrb[8].mxu1 %vm318_vm3, %v306_v1 }
  0x35   : > { %1222 = vmatprep.mubr.msk.bf16.mxu1 %vm1541_vm1, %v1540_v2 }
  0x37   : > { %1263 = vmatmul.mubr.msk.bf16.gmra.mrb[8].mxu0 %vm318_vm3, %v561_v5 }
  0x38   : > { %1266 = vmatprep.mubr.msk.bf16.mxu0 %vm1541_vm1, %v1540_v2 }
  0x3c   : > { %1223 = vmatmul.mubr.msk.bf16.gmra.mrb[12].mxu1 %vm318_vm3, %v314_v14 }
  0x3d   : > { %1226 = vmatprep.mubr.msk.bf16.mxu1 %vm1541_vm1, %v1540_v2 }
  0x3f   : > { %1267 = vmatmul.mubr.msk.bf16.gmra.mrb[12].mxu0 %vm318_vm3, %v569_v16 }
  0x40   : > { %1270 = vmatprep.mubr.msk.bf16.mxu0 %vm1541_vm1, %v1540_v2 }
  0x44   : > { %1227 = vmatmul.mubr.msk.bf16.gmra.mrb[16].mxu1 %vm318_vm3, %v317_v19 }
  0x45   : > { %1232 = vmatprep.mubr.msk.bf16.mxu1 %vm1541_vm1, %v1540_v2 }
  0x47   : > { %1271 = vmatmul.mubr.msk.bf16.gmra.mrb[16].mxu0 %vm318_vm3, %v572_v23 }
  0x48   : > { %1276 = vmatprep.mubr.msk.bf16.mxu0 %vm1541_vm1, %v1540_v2 }
  0x4c   : > { %1233 = vmatmul.mubr.msk.bf16.vlgmr.msra.gmra.mrb[0].mxu1 %vm318_vm3, %v1664_v10  ;;  %v684_v10 = vrot.slane %v1726_v50, 1 }
  0x4d   : > { %1236 = vmatprep.mubr.msk.bf16.mxu1 %vm1541_vm1, %v1540_v2 }
  0x4e   : > { %v685_v21 = vsel %vm678_vm4, %v682_v15, %v684_v10 }
  0x4f   : > { %1277 = vmatmul.mubr.msk.bf16.vlgmr.msra.gmra.mrb[0].mxu0 %vm318_vm3, %v681_v27 }
  0x50   : > { %1280 = vmatprep.mubr.msk.bf16.mxu0 %vm1541_vm1, %v1540_v2 }
  0x54   : > { %1237 = vmatmul.mubr.msk.bf16.gmra.mrb[4].mxu1 %vm318_vm3, %v1667_v11  ;;  %v686_v11 = vrot.slane %v1413_v0, 1 }
  0x55   : > { %1240 = vmatprep.mubr.msk.bf16.mxu1 %vm1541_vm1, %v1540_v2 }
  0x56   : > { %v687_v29 = vsel %vm678_vm4, %v684_v10, %v686_v11 }
  0x57   : > { %1281 = vmatmul.mubr.msk.bf16.gmra.mrb[4].mxu0 %vm318_vm3, %v683_v28 }
  0x58   : > { %1284 = vmatprep.mubr.msk.bf16.mxu0 %vm1541_vm1, %v1540_v2 }
  0x5c   : > { %1241 = vmatmul.mubr.msk.bf16.gmra.mrb[8].mxu1 %vm318_vm3, %v1690_v22  ;;  %v1114_v22 = vcombine.low %v1732_v54, %v1732_v54 }
  0x5d   : > { %1244 = vmatprep.mubr.msk.bf16.mxu1 %vm1541_vm1, %v1540_v2 }
  0x5f   : > { %1285 = vmatmul.mubr.msk.bf16.gmra.mrb[8].mxu0 %vm318_vm3, %v685_v21 }
  0x60   : > { %1288 = vmatprep.mubr.msk.bf16.mxu0 %vm1541_vm1, %v1540_v2 }
  0x64   : > { %1245 = vmatmul.mubr.msk.bf16.gmra.mrb[12].mxu1 %vm318_vm3, %v1720_v47 }
  0x65   : > { %1248 = vmatprep.mubr.msk.bf16.mxu1 %vm1541_vm1, %v1540_v2 }
  0x67   : > { %1289 = vmatmul.mubr.msk.bf16.gmra.mrb[12].mxu0 %vm318_vm3, %v687_v29 }
  0x68   : > { %1292 = vmatprep.mubr.msk.bf16.mxu0 %vm1541_vm1, %v1540_v2 }
  0x6c   : > { %1249 = vmatmul.mubr.msk.bf16.gmra.mrb[16].mxu1 %vm318_vm3, %v1114_v22 }
  0x6f   : > { %1293 = vmatmul.mubr.msk.bf16.gmra.mrb[16].mxu0 %vm318_vm3, %v686_v11 }
  0x94   : > { %v799_v30 = vpop.permute.xlu0 %798  ;;  %v809_v42 = vpop.permute.xlu1 %808 }
  0x98   : > { %v804_v2 = vpop.permute.xlu0 %803  ;;  %v814_v57 = vpop.permute.xlu1 %813 }
  0x9c   : > { %v819_v16 = vpop.permute.xlu0 %818  ;;  %v824_v23 = vpop.permute.xlu1 %823 }
 0x11f   : > { %v459_v31 = vpop.f32.mrb[0].mxu1 }
 0x120   : > { %v1234_v32 = vpop.f32.mrb[1].mxu1 }
 0x121   : > { %v462_v34 = vpop.f32.mrb[2].mxu1 }
 0x122   : > { %v740_v33 = vpop.f32.mrb[0].mxu0  ;;  %v1235_v37 = vpop.f32.mrb[3].mxu1 }
 0x123   : > { %v1296_v35 = vadd.f32 %v740_v33, %v459_v31  ;;  %v1278_v36 = vpop.f32.mrb[1].mxu0 }
 0x124   : > { %v743_v38 = vpop.f32.mrb[2].mxu0 }
 0x125   : > { %v841_v39 = vmul.f32 %v1296_v35, %v799_v30  ;;  %v1297_v40 = vadd.f32 %v743_v38, %v462_v34  ;;  %v1279_v41 = vpop.f32.mrb[3].mxu0  ;;  %v829_v34 = vpop.permute.xlu0 %828 }
 0x127   : > { %v842_v43 = vmul.f32 %v1297_v40, %v804_v2  ;;  %v467_v44 = vpop.f32.mrb[4].mxu1  ;;  %v911_v45 = vmul.f32 %v841_v39, %v841_v39  ;;  %v834_v2 = vpop.permute.xlu1 %833 }
 0x128   : > { %v1238_v49 = vpop.f32.mrb[5].mxu1 }
 0x129   : > { %v1164_v46 = vpack.c.bf16 %v842_v43, %v841_v39  ;;  %v896_v47 = vadd.f32 %v842_v43, %v841_v39  ;;  %v912_v48 = vmul.f32 %v842_v43, %v842_v43  ;;  %v470_v51 = vpop.f32.mrb[6].mxu1 }
 0x12a   : > { %v748_v50 = vpop.f32.mrb[4].mxu0  ;;  %v1239_v55 = vpop.f32.mrb[7].mxu1 }
 0x12b   : > { %1165 = vst [vmem:[%s1815_s8] sm:$0xff] %v1164_v46   ;;  %v920_v52 = vadd.f32 %v912_v48, %v911_v45  ;;  %v1298_v53 = vadd.f32 %v748_v50, %v467_v44  ;;  %v1282_v54 = vpop.f32.mrb[5].mxu0 }
 0x12c   : > { %v751_v56 = vpop.f32.mrb[6].mxu0  ;;  %v839_v54 = vpop.permute.xlu0 %838 }
 0x12d   : > { %v843_v58 = vmul.f32 %v1298_v53, %v809_v42  ;;  %v1299_v59 = vadd.f32 %v751_v56, %v470_v51  ;;  %v1283_v60 = vpop.f32.mrb[7].mxu0 }
 0x12f   : > { %v913_v61 = vmul.f32 %v843_v58, %v843_v58  ;;  %v844_v62 = vmul.f32 %v1299_v59, %v814_v57  ;;  %v897_v63 = vadd.f32 %v896_v47, %v843_v58  ;;  %v475_v0 = vpop.f32.mrb[8].mxu1 }
 0x130   : > { %v1242_v6 = vpop.f32.mrb[9].mxu1 }
 0x131   : > { %v1169_v1 = vpack.c.bf16 %v844_v62, %v843_v58  ;;  %v898_v3 = vadd.f32 %v897_v63, %v844_v62  ;;  %v914_v4 = vmul.f32 %v844_v62, %v844_v62  ;;  %v921_v5 = vadd.f32 %v920_v52, %v913_v61  ;;  %v478_v8 = vpop.f32.mrb[10].mxu1 }
 0x132   : > { %v756_v7 = vpop.f32.mrb[8].mxu0  ;;  %v1243_v14 = vpop.f32.mrb[11].mxu1 }
 0x133   : > { %1181 = vst [vmem:[%s1815_s8 + $0x8] sm:$0xff] %v1169_v1   ;;  %v922_v9 = vadd.f32 %v921_v5, %v914_v4  ;;  %v1300_v12 = vadd.f32 %v756_v7, %v475_v0  ;;  %v1286_v13 = vpop.f32.mrb[9].mxu0 }
 0x134   : > { %v759_v17 = vpop.f32.mrb[10].mxu0 }
 0x135   : > { %v845_v18 = vmul.f32 %v1300_v12, %v819_v16  ;;  %v1301_v19 = vadd.f32 %v759_v17, %v478_v8  ;;  %v1287_v20 = vpop.f32.mrb[11].mxu0 }
 0x137   : > { %v899_v24 = vadd.f32 %v898_v3, %v845_v18  ;;  %v915_v25 = vmul.f32 %v845_v18, %v845_v18  ;;  %v846_v26 = vmul.f32 %v1301_v19, %v824_v23  ;;  %v483_v27 = vpop.f32.mrb[12].mxu1 }
 0x138   : > { %v1246_v11 = vpop.f32.mrb[13].mxu1 }
 0x139   : > { %v923_v15 = vadd.f32 %v922_v9, %v915_v25  ;;  %v1174_v28 = vpack.c.bf16 %v846_v26, %v845_v18  ;;  %v900_v10 = vadd.f32 %v899_v24, %v846_v26  ;;  %v916_v21 = vmul.f32 %v846_v26, %v846_v26  ;;  %v486_v22 = vpop.f32.mrb[14].mxu1 }
 0x13a   : > { %v764_v29 = vpop.f32.mrb[12].mxu0  ;;  %v1247_v33 = vpop.f32.mrb[15].mxu1 }
 0x13b   : > { %1182 = vst [vmem:[%s1815_s8 + $0x10] sm:$0xff] %v1174_v28   ;;  %v924_v30 = vadd.f32 %v923_v15, %v916_v21  ;;  %v1302_v31 = vadd.f32 %v764_v29, %v483_v27  ;;  %v1290_v32 = vpop.f32.mrb[13].mxu0 }
 0x13c   : > { %v767_v35 = vpop.f32.mrb[14].mxu0 }
 0x13d   : > { %v847_v36 = vmul.f32 %v1302_v31, %v829_v34  ;;  %v1303_v37 = vadd.f32 %v767_v35, %v486_v22  ;;  %v1291_v38 = vpop.f32.mrb[15].mxu0 }
 0x13f   : > { %v901_v39 = vadd.f32 %v900_v10, %v847_v36  ;;  %v917_v40 = vmul.f32 %v847_v36, %v847_v36  ;;  %v848_v41 = vmul.f32 %v1303_v37, %v834_v2  ;;  %v491_v42 = vpop.f32.mrb[16].mxu1 }
 0x140   : > { %v1250_v47 = vpop.f32.mrb[17].mxu1 }
 0x141   : > { %v925_v43 = vadd.f32 %v924_v30, %v917_v40  ;;  %v1179_v44 = vpack.c.bf16 %v848_v41, %v847_v36  ;;  %v902_v45 = vadd.f32 %v901_v39, %v848_v41  ;;  %v918_v46 = vmul.f32 %v848_v41, %v848_v41  ;;  %v494_v49 = vpop.f32.mrb[18].mxu1 }
 0x142   : > { %v772_v48 = vpop.f32.mrb[16].mxu0  ;;  %v1251_v53 = vpop.f32.mrb[19].mxu1 }
 0x143   : > { %1183 = vst [vmem:[%s1815_s8 + $0x18] sm:$0xff] %v1179_v44   ;;  %v926_v50 = vadd.f32 %v925_v43, %v918_v46  ;;  %v1304_v51 = vadd.f32 %v772_v48, %v491_v42  ;;  %v1294_v52 = vpop.f32.mrb[17].mxu0 }
 0x144   : > { %v775_v55 = vpop.f32.mrb[18].mxu0 }
 0x145   : > { %v849_v56 = vmul.f32 %v1304_v51, %v839_v54  ;;  %v1295_v57 = vpop.f32.mrb[19].mxu0 }
 0x147   : > { %v1160_v58 = vpack.c.bf16 %v849_v56, %v849_v56  ;;  %v903_v59 = vadd.f32 %v902_v45, %v849_v56  ;;  %v919_v60 = vmul.f32 %v849_v56, %v849_v56 }
 0x149   : > { %895 = vst [vmem:[%s1815_s8 + $0x20] sm:$0xf] %v1160_v58  ;;  %v904_v61 = vrot.slane %v903_v59, 4  ;;  %v927_v62 = vadd.f32 %v926_v50, %v919_v60 }
 0x14a   : > { %1429 = shalt.err (!%p1426_p3)
}
 0x14b   : > { %s1430_s30 = scalar_lea.hbm %s1828_s13, 576  ;;  %s1434_s8 = scalar_lea.hbm %s1945_s3, 1152 }
 0x14c   : > { %p1431_p4 = scmp.ne.s32.totalorder %s1828_s13, %s1430_s30  ;;  %p1435_p9 = scmp.lt.u32.totalorder %s1828_s13, %s1945_s3 }
 0x14d   : > { %p1436_p10 = scmp.lt.u32.totalorder %s1434_s8, %s1430_s30  ;;  %p1438_p12 = scmp.lt.u32.totalorder %s1430_s30, %s1828_s13 }
 0x14e   : > { %p1432_p7 = pnand %p1431_p4, %p1618_p5 }
 0x14f   : > { %p1437_p11 = por %p1436_p10, %p1435_p9 }
 0x150   : > { %p1433_p8 = pneg %p1432_p7 }
 0x151   : > { %p1439_p13 = por %p1438_p12, %p1437_p11 }
 0x153   : > { %p1440_p0 = pnand %p1439_p13, %p1433_p8 }
 0x155   : > { %1443 = shalt.err (!%p1440_p0)
}
 0x156   : > { %s1544_s12 = smov 64   ;;  %s1545_s15 = smov 4   ;;  %v905_v63 = vadd.f32 %v904_v61, %v903_v59  ;;  %v928_v0 = vrot.slane %v927_v62, 4 }
 0x157   : > { %1348 = dma.vmem_to_hbm [thread:$0]  (%p1618_p5), %s1823_s10, 576, %s1828_s13, %s936_s14, %s1544_s12, %s1544_s12, %s1545_s15  }
 0x158   : > { %v929_v1 = vadd.f32 %v928_v0, %v927_v62  ;;  %v906_v3 = vrot.slane %v905_v63, 2  ;;  %s940_s16 = sand.u32 1, %s1599_s22   ;;  %s1148_s25 = sshll.u32 %s1599_s22, 4 }
 0x159   : > { %s227_s26 = scalar_lea.vmem [#allocation4], %s1812_s17  ;;  %s233_s6 = scalar_lea.vmem [#allocation6], %s1812_s17 }
 0x15a   : > { %v907_v4 = vadd.f32 %v906_v3, %v905_v63  ;;  %v930_v5 = vrot.slane %v929_v1, 2  ;;  %s973_s30 = sshll.u32 %s227_s26, 4  ;;  %s986_s7 = sshll.u32 %s233_s6, 4  ;;  %s1866_s30 = int_to_ptr.vmem [resolvable:$true] %s973_s30  ;;  %s1873_s7 = int_to_ptr.vmem [resolvable:$true] %s986_s7 }
 0x15b   : > { %s1864_s10 = scalar_lea.hbm %s1946_s4, %s1148_s25  ;;  %s1871_s14 = scalar_lea.hbm %s1947_s5, %s1148_s25 }
 0x15c   : > { %v908_v6 = vrot.slane %v907_v4, 1  ;;  %v931_v7 = vadd.f32 %v930_v5, %v929_v1  ;;  %s1875_s11 = scalar_lea.sflag [#allocation5], %s940_s16  ;;  %s1444_s12 = scalar_lea.vmem %s1866_s30, 16 }
 0x15d   : > { %p1445_p1 = scmp.ne.s32.totalorder %s1866_s30, %s1444_s12  ;;  %s1546_s15 = smov [#allocation4]  }
 0x15e   : > { %v909_v8 = vadd.f32 %v908_v6, %v907_v4  ;;  %v932_v9 = vrot.slane %v931_v7, 1  ;;  %s1448_s8 = sshll.u32 %s1546_s15, 4  ;;  %s1449_s8 = int_to_ptr.vmem [resolvable:$false] %s1448_s8 }
 0x15f   : > { %p1446_p2 = pnand %p1445_p1, %p1618_p5  ;;  %s1450_s9 = scalar_lea.vmem %s1449_s8, 32 }
 0x160   : > { %910 = vst [vmem:[%s227_s26] sm:$0x1] %v909_v8  ;;  %v933_v12 = vadd.f32 %v932_v9, %v931_v7  ;;  %p1451_p4 = scmp.lt.s32.totalorder %s1866_s30, %s1449_s8  ;;  %p1452_p7 = scmp.lt.s32.totalorder %s1450_s9, %s1444_s12 }
 0x161   : > { %p1447_p3 = pneg %p1446_p2 }
 0x162   : > { %p1453_p8 = por %p1452_p7, %p1451_p4 }
 0x164   : > { %p1454_p9 = pnand %p1453_p8, %p1447_p3 }
 0x166   : > { %1457 = shalt.err (!%p1454_p9)
}
 0x167   : > { %s1458_s16 = scalar_lea.hbm %s1864_s10, 16  ;;  %s1462_s22 = scalar_lea.hbm %s1946_s4, 32 }
 0x168   : > { %p1459_p10 = scmp.ne.s32.totalorder %s1864_s10, %s1458_s16  ;;  %p1463_p13 = scmp.lt.u32.totalorder %s1864_s10, %s1946_s4 }
 0x169   : > { %p1464_p0 = scmp.lt.u32.totalorder %s1462_s22, %s1458_s16  ;;  %p1466_p2 = scmp.lt.u32.totalorder %s1458_s16, %s1864_s10 }
 0x16a   : > { %p1460_p11 = pnand %p1459_p10, %p1618_p5 }
 0x16b   : > { %p1465_p1 = por %p1464_p0, %p1463_p13 }
 0x16c   : > { %p1461_p12 = pneg %p1460_p11 }
 0x16d   : > { %p1467_p3 = por %p1466_p2, %p1465_p1 }
 0x16f   : > { %p1468_p4 = pnand %p1467_p3, %p1461_p12 }
 0x171   : > { %1471 = shalt.err (!%p1468_p4)
}
 0x172   : > { %1349 = dma.vmem_to_hbm [thread:$0]  (%p1618_p5), %s1866_s30, 16, %s1864_s10, %s1875_s11   ;;  %934 = vst [vmem:[%s233_s6] sm:$0x1] %v933_v12 }
 0x173   : > { %s1472_s12 = scalar_lea.vmem %s1873_s7, 16  ;;  %s1547_s8 = smov [#allocation6]  }
 0x174   : > { %p1473_p7 = scmp.ne.s32.totalorder %s1873_s7, %s1472_s12  ;;  %s1476_s9 = sshll.u32 %s1547_s8, 4  ;;  %s1477_s9 = int_to_ptr.vmem [resolvable:$false] %s1476_s9 }
 0x175   : > { %s1478_s16 = scalar_lea.vmem %s1477_s9, 32  ;;  %p1479_p10 = scmp.lt.s32.totalorder %s1873_s7, %s1477_s9 }
 0x176   : > { %p1474_p8 = pnand %p1473_p7, %p1618_p5  ;;  %p1480_p11 = scmp.lt.s32.totalorder %s1478_s16, %s1472_s12 }
 0x178   : > { %p1475_p9 = pneg %p1474_p8  ;;  %p1481_p12 = por %p1480_p11, %p1479_p10 }
 0x17a   : > { %p1482_p13 = pnand %p1481_p12, %p1475_p9 }
 0x17c   : > { %1485 = shalt.err (!%p1482_p13)
}
 0x17d   : > { %s1486_s17 = scalar_lea.hbm %s1871_s14, 16  ;;  %s1490_s10 = scalar_lea.hbm %s1947_s5, 32 }
 0x17e   : > { %p1487_p0 = scmp.ne.s32.totalorder %s1871_s14, %s1486_s17  ;;  %p1491_p3 = scmp.lt.u32.totalorder %s1871_s14, %s1947_s5 }
 0x17f   : > { %p1492_p4 = scmp.lt.u32.totalorder %s1490_s10, %s1486_s17  ;;  %p1494_p8 = scmp.lt.u32.totalorder %s1486_s17, %s1871_s14 }
 0x180   : > { %p1488_p1 = pnand %p1487_p0, %p1618_p5 }
 0x181   : > { %p1493_p7 = por %p1492_p4, %p1491_p3 }
 0x182   : > { %p1489_p2 = pneg %p1488_p1 }
 0x183   : > { %p1495_p9 = por %p1494_p8, %p1493_p7 }
 0x185   : > { %p1496_p10 = pnand %p1495_p9, %p1489_p2 }
 0x187   : > { %1499 = shalt.err (!%p1496_p10)
}
 0x188   : > { %1350 = dma.vmem_to_hbm [thread:$0]  (%p1618_p5), %s1873_s7, 16, %s1871_s14, %s1875_s11  }
 0x189 PF: > { %p1364_p11 = scmp.ge.s32.totalorder %s1538_s21, 2  ;;  %s998_s22 = sand.u32 1, %s1526_s18  }
 0x18a   : > { %s999_s13 = scalar_lea.sflag [#allocation3], %s998_s22 }
 0x18b   : > { %p1355_p12 = pnand %p1364_p11, %p1622_p6 }
 0x18d   : > { %1517 = dma.done.wait (!%p1355_p12), %s999_s13, 576  }
 0x18e   : > { %1519 = vsyncadd (!%p1355_p12), %s999_s13, 4294966720  ;;  %s1007_s15 = sand.u32 1, %s1098_s23  }
 0x18f   : > { %s1008_s12 = scalar_lea.sflag [#allocation5], %s1007_s15 }
 0x190   : > { %1521 = dma.done.wait (!%p1355_p12), %s1008_s12, 32  }
 0x191   : > { %1523 = vsyncadd (!%p1355_p12), %s1008_s12, 4294967264  ;;  %p19_p5 = scmp.ge.s32.totalorder %s1603_s24, 4   ;;  %s1950_s18 = smov %s1530_s19 }
 0x192   : > { %s1951_s19 = smov %s1534_s20  ;;  %s1952_s20 = smov %s1616_s27 }
 0x193   : > { %s1953_s21 = smov %s1603_s24  ;;  %21 = sbr.rel (!%p19_p5) target bundleno = 5 (0x5), region = 102 }
 0x19a   :  { %1020 = vsyncpa [#allocation3], 1 }
 0x19b   :  { %1022 = vsyncpa [#allocation3 + $0x1], 1 }
 0x19c   :  { %1023 = vsyncpa [#allocation5], 1 }
 0x19d   :  { %1025 = vsyncpa [#allocation5 + $0x1], 1 }

</bundles_post_ra>
